<compile_context>
chip_gen: v6e
topology: v6e:2x2x1
jax: 0.10.0
libtpu: 0.0.40
codegen_flags: <defaults>
</compile_context>

<pallas_src>
import functools
import math

import jax
import jax.numpy as jnp
from jax.experimental import pallas as pl
from jax.experimental.pallas import tpu as pltpu

LOG_STD_MIN = -20.0
LOG_STD_MAX = 2.0
_HALF_LOG_2PI = 0.5 * math.log(2.0 * math.pi)

_WEIGHT_KEYS = ("w1", "b1", "w2", "b2", "w_heads", "b_heads")


def _round_up(x, m):
    return ((x + m - 1) // m) * m


def _actor_kernel(*refs, n_actions: int, head_pad: int,
                  evaluate: bool, with_logprob: bool, has_eps: bool):
    it = iter(refs)
    state_ref = next(it)
    eps_ref = next(it) if has_eps else None
    w1_ref, b1_ref, w2_ref, b2_ref, wh_ref, bh_ref = (next(it) for _ in range(6))
    out_a_ref = next(it)
    out_lp_ref = next(it) if with_logprob else None

    wdt = w1_ref.dtype
    x = state_ref[...]

    # feature trunk: ReLU(Linear) -> ReLU(Linear); f32 MXU accumulation.
    h1 = jnp.dot(x, w1_ref[...], preferred_element_type=jnp.float32) + b1_ref[...]
    h1 = jnp.maximum(h1, 0.0)
    h2 = jnp.dot(h1.astype(wdt), w2_ref[...],
                 preferred_element_type=jnp.float32) + b2_ref[...]
    h2 = jnp.maximum(h2, 0.0)

    # fused, lane-aligned heads: one MXU pass -> [mu (lanes 0..), pad,
    # log_std (lanes head_pad..), pad].  Both slices start at a 128-lane
    # boundary offset, so no cross-lane movement is needed afterwards.
    heads = jnp.dot(h2.astype(wdt), wh_ref[...],
                    preferred_element_type=jnp.float32) + bh_ref[...]
    mu = heads[:, :n_actions]
    log_std = jnp.clip(heads[:, head_pad:head_pad + n_actions],
                       LOG_STD_MIN, LOG_STD_MAX)

    eps = eps_ref[...].astype(jnp.float32) if has_eps else None

    if evaluate:
        # std / z are dead in eval mode -> skip exp (EUP) and the rsample math.
        action = jnp.tanh(mu)
    else:
        std = jnp.exp(log_std)
        action = jnp.tanh(mu + std * eps)      # rsample: z = mu + std * eps

    out_a_ref[...] = action.astype(out_a_ref.dtype)

    if with_logprob:
        # Normal(mu, std).log_prob(z) with z = mu + std*eps
        #   = -0.5*eps^2 - log_std - 0.5*log(2*pi)
        log_prob = -0.5 * eps * eps - log_std - _HALF_LOG_2PI
        # tanh correction (matches the PyTorch reference: uses `action`, which
        # is tanh(mu) in evaluate mode -> intentional reference parity).
        log_prob = log_prob - jnp.log(1.0 - action * action + 1e-7)
        out_lp_ref[...] = jnp.sum(log_prob, axis=-1, keepdims=True)


def actor_forward(state, eps, params, *, evaluate=False, with_logprob=True,
                  block_b=1024):
    """Forward pass of the TQC Actor.

    params: dict from make_params (weights [in, out], heads pre-fused and
    zero-padded to a 128-lane-aligned [hidden, 2*head_pad] block).
    Returns (action [B, n_actions] f32, log_prob [B, 1] f32 or None).
    """
    B, n_states = state.shape
    n_actions = params["n_actions"]
    head_pad = params["head_pad"]
    hidden = params["w1"].shape[1]
    wdt = params["w1"].dtype
    has_eps = with_logprob or not evaluate
    if has_eps:
        assert eps is not None and eps.shape == (B, n_actions)

    # Batch tiling: one full-batch block for tiny B; otherwise at least two
    # grid steps (so v7x's 2 TensorCores split the "parallel" axis), capped at
    # block_b rows per step.  Sublane alignment: 8 rows (f32) / 16 rows (bf16).
    sub = 16 if wdt == jnp.bfloat16 else 8
    if B <= max(sub, 16):
        tb = B
    else:
        tb = min(_round_up(block_b, sub), _round_up((B + 1) // 2, sub))
    grid = (pl.cdiv(B, tb),)

    def row_spec(cols):
        return pl.BlockSpec((tb, cols), lambda i: (i, 0))

    def const_spec(shape):
        # weights: same block every grid step -> stay VMEM-resident.
        return pl.BlockSpec(shape, lambda i: (0, 0))

    state_c = state.astype(wdt)          # bf16 state halves the HBM stream

    in_arrays = [state_c]
    in_specs = [row_spec(n_states)]
    if has_eps:
        in_arrays.append(eps.astype(jnp.float32))
        in_specs.append(row_spec(n_actions))
    for k in _WEIGHT_KEYS:
        in_arrays.append(params[k])
        in_specs.append(const_spec(params[k].shape))

    out_shapes = [jax.ShapeDtypeStruct((B, n_actions), jnp.float32)]
    out_specs = [row_spec(n_actions)]
    if with_logprob:
        out_shapes.append(jax.ShapeDtypeStruct((B, 1), jnp.float32))
        out_specs.append(row_spec(1))

    flops = 2 * B * (n_states * hidden + hidden * hidden + hidden * 2 * head_pad)
    bytes_accessed = (
        state_c.size * state_c.dtype.itemsize
        + (B * n_actions * 4 if has_eps else 0)
        + sum(params[k].size * params[k].dtype.itemsize for k in _WEIGHT_KEYS)
        + B * n_actions * 4 + (B * 4 if with_logprob else 0))
    cost = pl.CostEstimate(flops=int(flops),
                           transcendentals=int(3 * B * n_actions),
                           bytes_accessed=int(bytes_accessed))

    kernel = functools.partial(_actor_kernel, n_actions=n_actions,
                               head_pad=head_pad, evaluate=evaluate,
                               with_logprob=with_logprob, has_eps=has_eps)

    # TODO(synk): at large hidden (>=1024), pin the constant weight specs to a
    # single buffer (pipeline_mode=pl.Buffered(1)) to stay under v7x's 64 MiB.
    result = pl.pallas_call(
        kernel,
        out_shape=tuple(out_shapes) if with_logprob else out_shapes[0],
        grid=grid,
        in_specs=in_specs,
        out_specs=tuple(out_specs) if with_logprob else out_specs[0],
        compiler_params=pltpu.CompilerParams(
            dimension_semantics=("parallel",),
            vmem_limit_bytes=32 * 1024 * 1024),
        cost_estimate=cost,
    )(*in_arrays)

    if with_logprob:
        action, log_prob = result
    else:
        action, log_prob = result, None
    return action, log_prob


def _init_linear(key, fan_in, fan_out):
    """Deterministic PyTorch-style init: U(-1/sqrt(fan_in), 1/sqrt(fan_in))."""
    kw, kb = jax.random.split(key)
    bound = 1.0 / math.sqrt(fan_in)
    w = jax.random.uniform(kw, (fan_in, fan_out), jnp.float32, -bound, bound)
    b = jax.random.uniform(kb, (1, fan_out), jnp.float32, -bound, bound)
    return w, b


def make_params(key, n_states, hidden, n_actions, dtype=jnp.float32):
    """Build params; heads are fused and zero-padded so that mu starts at lane
    0 and log_std starts at lane `head_pad` (a multiple of 128)."""
    k1, k2, k3, k4 = jax.random.split(key, 4)
    w1, b1 = _init_linear(k1, n_states, hidden)
    w2, b2 = _init_linear(k2, hidden, hidden)
    w_mu, b_mu = _init_linear(k3, hidden, n_actions)
    w_ls, b_ls = _init_linear(k4, hidden, n_actions)

    hp = _round_up(n_actions, 128)
    w_heads = jnp.zeros((hidden, 2 * hp), jnp.float32)
    w_heads = w_heads.at[:, :n_actions].set(w_mu)
    w_heads = w_heads.at[:, hp:hp + n_actions].set(w_ls)
    b_heads = jnp.zeros((1, 2 * hp), jnp.float32)
    b_heads = b_heads.at[:, :n_actions].set(b_mu)
    b_heads = b_heads.at[:, hp:hp + n_actions].set(b_ls)

    return dict(
        w1=w1.astype(dtype), b1=b1,             # biases stay f32
        w2=w2.astype(dtype), b2=b2,
        w_heads=w_heads.astype(dtype), b_heads=b_heads,
        n_actions=n_actions, head_pad=hp)


def _reference_forward(state, eps, params, *, evaluate=False, with_logprob=True):
    """Pure-JAX reference (mirrors the PyTorch module with external eps)."""
    n_actions, hp = params["n_actions"], params["head_pad"]
    wdt = params["w1"].dtype
    hi = jax.lax.Precision.HIGHEST
    x = state.astype(wdt)
    h1 = jnp.maximum(jnp.dot(x, params["w1"], precision=hi,
                             preferred_element_type=jnp.float32) + params["b1"], 0.0)
    h2 = jnp.maximum(jnp.dot(h1.astype(wdt), params["w2"], precision=hi,
                             preferred_element_type=jnp.float32) + params["b2"], 0.0)
    heads = jnp.dot(h2.astype(wdt), params["w_heads"], precision=hi,
                    preferred_element_type=jnp.float32) + params["b_heads"]
    mu = heads[:, :n_actions]
    log_std = jnp.clip(heads[:, hp:hp + n_actions], LOG_STD_MIN, LOG_STD_MAX)
    if evaluate:
        action = jnp.tanh(mu)
    else:
        std = jnp.exp(log_std)
        action = jnp.tanh(mu + std * eps)
    if not with_logprob:
        return action, None
    log_prob = -0.5 * eps * eps - log_std - _HALF_LOG_2PI
    log_prob = log_prob - jnp.log(1.0 - action * action + 1e-7)
    return action, jnp.sum(log_prob, axis=-1, keepdims=True)


if __name__ == "__main__":
    key = jax.random.PRNGKey(0)
    k_param, k_state, k_eps = jax.random.split(key, 3)

    # B chosen so the grid splits into 2 "parallel" steps (v7x gets both TCs).
    B, n_states, hidden, n_actions = 64, 8, 32, 4

    params = make_params(k_param, n_states, hidden, n_actions, dtype=jnp.float32)
    state = jax.random.normal(k_state, (B, n_states), jnp.float32)
    eps = jax.random.normal(k_eps, (B, n_actions), jnp.float32)

    # --- f32, sample path (rsample + log_prob) ---
    action, log_prob = actor_forward(state, eps, params,
                                     evaluate=False, with_logprob=True)
    jax.block_until_ready((action, log_prob))
    assert action.shape == (B, n_actions) and log_prob.shape == (B, 1)
    ref_a, ref_lp = _reference_forward(state, eps, params)
    assert jnp.allclose(action, ref_a, atol=2e-3, rtol=2e-3)
    assert jnp.allclose(log_prob, ref_lp, atol=2e-3, rtol=2e-3)

    # --- f32, evaluate path with log_prob (reference-parity quirk) ---
    action_e, log_prob_e = actor_forward(state, eps, params,
                                         evaluate=True, with_logprob=True)
    jax.block_until_ready((action_e, log_prob_e))
    ref_ae, ref_lpe = _reference_forward(state, eps, params, evaluate=True)
    assert jnp.allclose(action_e, ref_ae, atol=2e-3, rtol=2e-3)
    assert jnp.allclose(log_prob_e, ref_lpe, atol=2e-3, rtol=2e-3)

    # --- f32, sample path without log_prob (single output) ---
    action_n, lp_n = actor_forward(state, eps, params,
                                   evaluate=False, with_logprob=False)
    jax.block_until_ready(action_n)
    assert lp_n is None
    assert jnp.allclose(action_n, ref_a, atol=2e-3, rtol=2e-3)

    # --- f32, evaluate without log_prob (eps input dropped entirely) ---
    action_en, lp_en = actor_forward(state, None, params,
                                     evaluate=True, with_logprob=False)
    jax.block_until_ready(action_en)
    assert lp_en is None
    assert jnp.allclose(action_en, ref_ae, atol=2e-3, rtol=2e-3)

    # --- bf16 weights/activations path (f32 accumulation + f32 tail) ---
    params_bf = make_params(k_param, n_states, hidden, n_actions,
                            dtype=jnp.bfloat16)
    a_bf, lp_bf = actor_forward(state, eps, params_bf,
                                evaluate=False, with_logprob=True)
    jax.block_until_ready((a_bf, lp_bf))
    ra_bf, rlp_bf = _reference_forward(state, eps, params_bf)
    assert jnp.allclose(a_bf, ra_bf, atol=2e-2, rtol=2e-2)
    assert jnp.allclose(lp_bf, rlp_bf, atol=5e-2, rtol=2e-2)

    print("KERNEL_OK")
</pallas_src>

<mosaic_0001>
module attributes {stable_mosaic.version = 11 : i64} {
  func.func @_actor_kernel(%arg0: i32, %arg1: memref<32x8xf32, #tpu.memory_space<vmem>>, %arg2: memref<32x4xf32, #tpu.memory_space<vmem>>, %arg3: memref<8x32xf32, #tpu.memory_space<vmem>>, %arg4: memref<1x32xf32, #tpu.memory_space<vmem>>, %arg5: memref<32x32xf32, #tpu.memory_space<vmem>>, %arg6: memref<1x32xf32, #tpu.memory_space<vmem>>, %arg7: memref<32x256xf32, #tpu.memory_space<vmem>>, %arg8: memref<1x256xf32, #tpu.memory_space<vmem>>, %arg9: memref<32x4xf32, #tpu.memory_space<vmem>>, %arg10: memref<32x1xf32, #tpu.memory_space<vmem>>) attributes {dimension_semantics = [#tpu.dimension_semantics<parallel>], iteration_bounds = array<i64: 2>, scalar_prefetch = 0 : i64, scratch_operands = 0 : i64, tpu.core_type = #tpu.core_type<tc>, window_params = [{transform_indices = @transform_0, window_bounds = array<i64: 32, 8>}, {transform_indices = @transform_1, window_bounds = array<i64: 32, 4>}, {pipeline_mode = #tpu.pipeline_mode<synchronous>, transform_indices = @transform_2, window_bounds = array<i64: 8, 32>}, {pipeline_mode = #tpu.pipeline_mode<synchronous>, transform_indices = @transform_3, window_bounds = array<i64: 1, 32>}, {pipeline_mode = #tpu.pipeline_mode<synchronous>, transform_indices = @transform_4, window_bounds = array<i64: 32, 32>}, {pipeline_mode = #tpu.pipeline_mode<synchronous>, transform_indices = @transform_5, window_bounds = array<i64: 1, 32>}, {pipeline_mode = #tpu.pipeline_mode<synchronous>, transform_indices = @transform_6, window_bounds = array<i64: 32, 256>}, {pipeline_mode = #tpu.pipeline_mode<synchronous>, transform_indices = @transform_7, window_bounds = array<i64: 1, 256>}, {transform_indices = @transform_8, window_bounds = array<i64: 32, 4>}, {transform_indices = @transform_9, window_bounds = array<i64: 32, 1>}]} {
    %c0 = arith.constant 0 : index
    %c0_0 = arith.constant 0 : index
    %0 = vector.load %arg1[%c0, %c0_0] : memref<32x8xf32, #tpu.memory_space<vmem>>, vector<32x8xf32>
    %c0_1 = arith.constant 0 : index
    %c0_2 = arith.constant 0 : index
    %1 = vector.load %arg3[%c0_1, %c0_2] : memref<8x32xf32, #tpu.memory_space<vmem>>, vector<8x32xf32>
    %cst = arith.constant dense<0.000000e+00> : vector<32x32xf32>
    %2 = tpu.matmul %0, %1, %cst {dimension_numbers = #tpu.dot_dimension_numbers<[1], [0], [0], [1], [0, 0, 1, 1], [], []>} : vector<32x8xf32>, vector<8x32xf32>, vector<32x32xf32> -> vector<32x32xf32>
    %c0_3 = arith.constant 0 : index
    %c0_4 = arith.constant 0 : index
    %3 = vector.load %arg4[%c0_3, %c0_4] : memref<1x32xf32, #tpu.memory_space<vmem>>, vector<1x32xf32>
    %4 = vector.broadcast %3 : vector<1x32xf32> to vector<32x32xf32>
    %5 = arith.addf %2, %4 : vector<32x32xf32>
    %cst_5 = arith.constant 0.000000e+00 : f32
    %6 = vector.broadcast %cst_5 : f32 to vector<32x32xf32>
    %7 = arith.maximumf %5, %6 : vector<32x32xf32>
    %c0_6 = arith.constant 0 : index
    %c0_7 = arith.constant 0 : index
    %8 = vector.load %arg5[%c0_6, %c0_7] : memref<32x32xf32, #tpu.memory_space<vmem>>, vector<32x32xf32>
    %cst_8 = arith.constant dense<0.000000e+00> : vector<32x32xf32>
    %9 = tpu.matmul %7, %8, %cst_8 {dimension_numbers = #tpu.dot_dimension_numbers<[1], [0], [0], [1], [0, 0, 1, 1], [], []>} : vector<32x32xf32>, vector<32x32xf32>, vector<32x32xf32> -> vector<32x32xf32>
    %c0_9 = arith.constant 0 : index
    %c0_10 = arith.constant 0 : index
    %10 = vector.load %arg6[%c0_9, %c0_10] : memref<1x32xf32, #tpu.memory_space<vmem>>, vector<1x32xf32>
    %11 = vector.broadcast %10 : vector<1x32xf32> to vector<32x32xf32>
    %12 = arith.addf %9, %11 : vector<32x32xf32>
    %cst_11 = arith.constant 0.000000e+00 : f32
    %13 = vector.broadcast %cst_11 : f32 to vector<32x32xf32>
    %14 = arith.maximumf %12, %13 : vector<32x32xf32>
    %c0_12 = arith.constant 0 : index
    %c0_13 = arith.constant 0 : index
    %15 = vector.load %arg7[%c0_12, %c0_13] : memref<32x256xf32, #tpu.memory_space<vmem>>, vector<32x256xf32>
    %cst_14 = arith.constant dense<0.000000e+00> : vector<32x256xf32>
    %16 = tpu.matmul %14, %15, %cst_14 {dimension_numbers = #tpu.dot_dimension_numbers<[1], [0], [0], [1], [0, 0, 1, 1], [], []>} : vector<32x32xf32>, vector<32x256xf32>, vector<32x256xf32> -> vector<32x256xf32>
    %c0_15 = arith.constant 0 : index
    %c0_16 = arith.constant 0 : index
    %17 = vector.load %arg8[%c0_15, %c0_16] : memref<1x256xf32, #tpu.memory_space<vmem>>, vector<1x256xf32>
    %18 = vector.broadcast %17 : vector<1x256xf32> to vector<32x256xf32>
    %19 = arith.addf %16, %18 : vector<32x256xf32>
    %20 = vector.extract_strided_slice %19 {offsets = [0, 0], sizes = [32, 4], strides = [1, 1]} : vector<32x256xf32> to vector<32x4xf32>
    %21 = vector.extract_strided_slice %19 {offsets = [0, 128], sizes = [32, 4], strides = [1, 1]} : vector<32x256xf32> to vector<32x4xf32>
    %cst_17 = arith.constant -2.000000e+01 : f32
    %cst_18 = arith.constant 2.000000e+00 : f32
    %22 = vector.broadcast %cst_17 : f32 to vector<32x4xf32>
    %23 = arith.maximumf %22, %21 : vector<32x4xf32>
    %24 = vector.broadcast %cst_18 : f32 to vector<32x4xf32>
    %25 = arith.minimumf %24, %23 : vector<32x4xf32>
    %c0_19 = arith.constant 0 : index
    %c0_20 = arith.constant 0 : index
    %26 = vector.load %arg2[%c0_19, %c0_20] : memref<32x4xf32, #tpu.memory_space<vmem>>, vector<32x4xf32>
    %27 = math.exp %25 : vector<32x4xf32>
    %28 = arith.mulf %27, %26 : vector<32x4xf32>
    %29 = arith.addf %20, %28 : vector<32x4xf32>
    %30 = math.tanh %29 : vector<32x4xf32>
    %c0_21 = arith.constant 0 : index
    %c0_22 = arith.constant 0 : index
    %31 = vector.load %arg9[%c0_21, %c0_22] : memref<32x4xf32, #tpu.memory_space<vmem>>, vector<32x4xf32>
    tpu.vector_store %arg9[%c0_21, %c0_22], %30 {strides = array<i32>} : memref<32x4xf32, #tpu.memory_space<vmem>>, vector<32x4xf32>,
    %cst_23 = arith.constant -5.000000e-01 : f32
    %32 = vector.broadcast %cst_23 : f32 to vector<32x4xf32>
    %33 = arith.mulf %32, %26 : vector<32x4xf32>
    %34 = arith.mulf %33, %26 : vector<32x4xf32>
    %35 = arith.subf %34, %25 : vector<32x4xf32>
    %cst_24 = arith.constant 0.918938517 : f32
    %36 = vector.broadcast %cst_24 : f32 to vector<32x4xf32>
    %37 = arith.subf %35, %36 : vector<32x4xf32>
    %38 = arith.mulf %30, %30 : vector<32x4xf32>
    %cst_25 = arith.constant 1.000000e+00 : f32
    %39 = vector.broadcast %cst_25 : f32 to vector<32x4xf32>
    %40 = arith.subf %39, %38 : vector<32x4xf32>
    %cst_26 = arith.constant 1.000000e-07 : f32
    %41 = vector.broadcast %cst_26 : f32 to vector<32x4xf32>
    %42 = arith.addf %40, %41 : vector<32x4xf32>
    %43 = math.log %42 : vector<32x4xf32>
    %44 = arith.subf %37, %43 : vector<32x4xf32>
    %cst_27 = arith.constant dense<0.000000e+00> : vector<32xf32>
    %45 = vector.multi_reduction <add>, %44, %cst_27 [1] : vector<32x4xf32> to vector<32xf32>
    %46 = vector.shape_cast %45 : vector<32xf32> to vector<32x1xf32>
    %c0_28 = arith.constant 0 : index
    %c0_29 = arith.constant 0 : index
    %47 = vector.load %arg10[%c0_28, %c0_29] : memref<32x1xf32, #tpu.memory_space<vmem>>, vector<32x1xf32>
    tpu.vector_store %arg10[%c0_28, %c0_29], %46 {strides = array<i32>} : memref<32x1xf32, #tpu.memory_space<vmem>>, vector<32x1xf32>,
    return
  }
  func.func @transform_0(%arg0: i32) -> (i32, i32) {
    %c0_i32 = arith.constant 0 : i32
    %c0_i32_0 = arith.constant 0 : i32
    return %arg0, %c0_i32 : i32, i32
  }
  func.func @transform_1(%arg0: i32) -> (i32, i32) {
    %c0_i32 = arith.constant 0 : i32
    %c0_i32_0 = arith.constant 0 : i32
    return %arg0, %c0_i32 : i32, i32
  }
  func.func @transform_2(%arg0: i32) -> (i32, i32) {
    %c0_i32 = arith.constant 0 : i32
    %c0_i32_0 = arith.constant 0 : i32
    %c0_i32_1 = arith.constant 0 : i32
    return %c0_i32, %c0_i32_0 : i32, i32
  }
  func.func @transform_3(%arg0: i32) -> (i32, i32) {
    %c0_i32 = arith.constant 0 : i32
    %c0_i32_0 = arith.constant 0 : i32
    %c0_i32_1 = arith.constant 0 : i32
    return %c0_i32, %c0_i32_0 : i32, i32
  }
  func.func @transform_4(%arg0: i32) -> (i32, i32) {
    %c0_i32 = arith.constant 0 : i32
    %c0_i32_0 = arith.constant 0 : i32
    %c0_i32_1 = arith.constant 0 : i32
    return %c0_i32, %c0_i32_0 : i32, i32
  }
  func.func @transform_5(%arg0: i32) -> (i32, i32) {
    %c0_i32 = arith.constant 0 : i32
    %c0_i32_0 = arith.constant 0 : i32
    %c0_i32_1 = arith.constant 0 : i32
    return %c0_i32, %c0_i32_0 : i32, i32
  }
  func.func @transform_6(%arg0: i32) -> (i32, i32) {
    %c0_i32 = arith.constant 0 : i32
    %c0_i32_0 = arith.constant 0 : i32
    %c0_i32_1 = arith.constant 0 : i32
    return %c0_i32, %c0_i32_0 : i32, i32
  }
  func.func @transform_7(%arg0: i32) -> (i32, i32) {
    %c0_i32 = arith.constant 0 : i32
    %c0_i32_0 = arith.constant 0 : i32
    %c0_i32_1 = arith.constant 0 : i32
    return %c0_i32, %c0_i32_0 : i32, i32
  }
  func.func @transform_8(%arg0: i32) -> (i32, i32) {
    %c0_i32 = arith.constant 0 : i32
    %c0_i32_0 = arith.constant 0 : i32
    return %arg0, %c0_i32 : i32, i32
  }
  func.func @transform_9(%arg0: i32) -> (i32, i32) {
    %c0_i32 = arith.constant 0 : i32
    %c0_i32_0 = arith.constant 0 : i32
    return %arg0, %c0_i32 : i32, i32
  }
}

</mosaic_0001>

<bundles_post_ra>
// kernel: tpu_custom_call.1
= control target key start
LH: loop header
LB: loop body
LE: loop exit
PB: predicated region body
PF: predicated region fallthrough
CT: control target
= control target key end

     0   :  { %s1084_s30 = smov 0   ;;  %s1193_s0 = inlined_call_operand.vmem [shape: f32[64,8], index: 0, kind: input, shape index: {}]   ;;  %s1194_s1 = inlined_call_operand.vmem [shape: f32[64,4], index: 1, kind: input, shape index: {}]   ;;  %s1195_s2 = inlined_call_operand.vmem [shape: f32[8,32], index: 2, kind: input, shape index: {}]   ;;  %s1196_s3 = inlined_call_operand.vmem [shape: f32[1,32], index: 3, kind: input, shape index: {}]   ;;  %s1197_s4 = inlined_call_operand.vmem [shape: f32[32,32], index: 4, kind: input, shape index: {}]   ;;  %s1198_s5 = inlined_call_operand.vmem [shape: f32[1,32], index: 5, kind: input, shape index: {}]   ;;  %s1199_s6 = inlined_call_operand.vmem [shape: f32[32,256], index: 6, kind: input, shape index: {}]   ;;  %s1200_s7 = inlined_call_operand.vmem [shape: f32[1,256], index: 7, kind: input, shape index: {}]   ;;  %s1201_s8 = inlined_call_operand.vmem [shape: f32[64,4], index: 8, kind: output, shape index: {0}]   ;;  %s1202_s9 = inlined_call_operand.vmem [shape: f32[64,1], index: 9, kind: output, shape index: {1}]  }
   0x1 LB: > { %s916_s10 = sadd.s32 4294967295, %s1031_s30   ;;  %p920_p0 = scmp.ge.s32.totalorder %s1031_s30, 1  ;;  %s1031_s30 = sphi %s1084_s30, %s20_s30  }
   0x2   : > { %p302_p1 = scmp.lt.s32.totalorder %s1031_s30, 3 }
   0x4   : > { %p303_p2 = pnand %p920_p0, %p302_p1 }
   0x5   : > { %s921_s13 = sshll.u32 (!%p303_p2), %s916_s10, 2 }
   0x6   : > { %306 = sbr.rel (%p303_p2) target bundleno = 826 (0x33a), region = 52  ;;  %p349_p3 = scmp.lt.s32.totalorder (!%p303_p2), %s921_s13, 7 }
   0xb   : > { %v376_v0 = vld [vmem:[%s1195_s2] sm:$0xff]  ;;  %s1204_s13 = smov (!%p349_p3, %s921_s13), 7  ;;  %vm384_vm0 = vcmask 64512   ;;  %v489_v5 = vld [vmem:[%s1197_s4 + $0x18] sm:$0xff]  ;;  %v488_v6 = vld [vmem:[%s1197_s4 + $0x10] sm:$0xff]  ;;  %vm497_vm1 = vcmask 261120   ;;  %v609_v44 = vlaneseq }
   0xc   : > { %962 = vmatprep.subr.mxu0 %v376_v0  ;;  %s1095_s14 = sshll.u32 %s1204_s13, 3  ;;  %970 = vmatprep.subr.mxu1 %v489_v5  ;;  %v487_v7 = vld [vmem:[%s1197_s4 + $0x8] sm:$0xff]  ;;  %v486_v8 = vld [vmem:[%s1197_s4] sm:$0xff]  ;;  %v606_v9 = vld [vmem:[%s1199_s6 + $0x38] sm:$0xff]  ;;  %v1033_v30 = vmov 0.0   ;;  %vm752_vm2 = vcmask 31744  }
   0xd   : > { %963 = vmatpush3.msra.mxu0 %v376_v0  ;;  %s352_s17 = scalar_lea.vmem %s1193_s0, %s1095_s14  ;;  %971 = vmatpush3.msra.mxu1 %v489_v5  ;;  %v605_v10 = vld [vmem:[%s1199_s6 + $0x30] sm:$0xff]  ;;  %v929_v11 = vld [vmem:[%s1196_s3] ss:$0 sm:$0xff]  ;;  %v604_v24 = vld [vmem:[%s1199_s6 + $0x28] sm:$0xff]  ;;  %v610_v45 = vshrl.u32 %v609_v44, 7  ;;  %s358_s11 = scalar_lea.vmem %s1194_s1, %s1095_s14  ;;  %vm809_vm3 = vcmask 7168  }
   0xe   : > { %v372_v1 = vld [vmem:[%s352_s17] sm:$0xff]  ;;  %v373_v2 = vld [vmem:[%s352_s17 + $0x8] sm:$0xff]  ;;  %v374_v3 = vld [vmem:[%s352_s17 + $0x10] sm:$0xff]  ;;  %972 = vmatprep.subr.mxu1 %v488_v6  ;;  %655 = vmatprep.subr.mxu0 %v606_v9  ;;  %s364_s15 = scalar_lea.vmem %s1201_s8, %s1095_s14  ;;  %s370_s18 = scalar_lea.vmem %s1202_s9, %s1095_s14 }
   0xf   : > { %964 = vmatprep.mubr.msk.f32.mxu0 %vm384_vm0, %v372_v1  ;;  %v375_v4 = vld [vmem:[%s352_s17 + $0x18] sm:$0xff]  ;;  %973 = vmatpush3.msra.mxu1 %v488_v6  ;;  %v603_v25 = vld [vmem:[%s1199_s6 + $0x20] sm:$0xff]  ;;  %v601_v27 = vld [vmem:[%s1199_s6 + $0x10] sm:$0xff]  ;;  %v615_v46 = vsub.s32 1, %v610_v45 }
  0x10   : > { %965 = vmatmul.mubr.msk.f32.vlgmr.msra.gmra.mxu0 %vm384_vm0, %v373_v2  ;;  %974 = vmatprep.subr.mxu1 %v487_v7  ;;  %v602_v26 = vld [vmem:[%s1199_s6 + $0x18] sm:$0xff]  ;;  %v600_v28 = vld [vmem:[%s1199_s6 + $0x8] sm:$0xff]  ;;  %v599_v29 = vld [vmem:[%s1199_s6] sm:$0xff] }
  0x11   : > { %967 = vmatprep.mubr.msk.f32.mxu0 %vm384_vm0, %v374_v3  ;;  %975 = vmatpush3.msra.mxu1 %v487_v7  ;;  %v934_v32 = vld [vmem:[%s1198_s5] ss:$0 sm:$0xff] }
  0x12   : > { %976 = vmatprep.subr.mxu1 %v486_v8  ;;  %656 = vmatpush1.msra.mxu0 %v605_v10  ;;  %v607_v47 = vld [vmem:[%s1200_s7] sm:$0x3] }
  0x13   : > { %977 = vmatpush3.msra.mxu1 %v486_v8  ;;  %657 = vmatprep.subr.mxu0 %v604_v24  ;;  %v616_v48 = vrot.slane %v607_v47, %v615_v46  ;;  %v611_v8 = vsub.s32 0, %v610_v45 }
  0x14   : > { %968 = vmatmul.mubr.msk.f32.gmra.mxu0 %vm384_vm0, %v375_v4  ;;  %984 = vmatprep.subr.mxu1 %v606_v9 }
  0x15   : > { %658 = vmatpush1.msra.mxu0 %v603_v25  ;;  %695 = vmatprep.mubr.f32.mxu0 %v1033_v30 }
  0x16   : > { %659 = vmatprep.subr.mxu0 %v602_v26 }
  0x17   : > { %660 = vmatpush1.msra.mxu0 %v601_v27 }
  0x18   : > { %661 = vmatprep.subr.mxu0 %v600_v28 }
  0x19   : > { %662 = vmatpush1.msra.mxu0 %v599_v29 }
  0xd0   : > { %v966_v12 = vpop.f32.mrf.mxu0 }
  0xd1   : > { %v469_v13 = vadd.f32 %v966_v12, %v929_v11  ;;  %v728_v12 = vld [vmem:[%s358_s11] sm:$0xff] }
  0xd2   : > { %v463_v14 = vpop.f32.mrf.mxu0 }
  0xd3   : > { %v464_v15 = vadd.f32 %v929_v11, %v463_v14  ;;  %v483_v19 = vmax.f32 %v469_v13, 0.0 }
  0xd4   : > { %v969_v16 = vpop.f32.mrf.mxu0 }
  0xd5   : > { %v482_v17 = vmax.f32 %v464_v15, 0.0  ;;  %v479_v18 = vadd.f32 %v969_v16, %v929_v11  ;;  %v731_v16 = vld [vmem:[%s358_s11 + $0x18] sm:$0xff] }
  0xd6   : > { %v473_v20 = vpop.f32.mrf.mxu0 }
  0xd7   : > { %v474_v21 = vadd.f32 %v929_v11, %v473_v20  ;;  %978 = vmatprep.mubr.msk.f32.mxu1 %vm497_vm1, %v482_v17  ;;  %v485_v22 = vmax.f32 %v479_v18, 0.0 }
  0xd8   : > { %979 = vmatmul.mubr.msk.f32.vlgmr.msra.gmra.mxu1 %vm497_vm1, %v483_v19 }
  0xd9   : > { %v484_v23 = vmax.f32 %v474_v21, 0.0  ;;  %988 = vmatpush1.msra.mxu1 %v605_v10  ;;  %v612_v10 = vrot.slane %v607_v47, %v611_v8  ;;  %v729_v21 = vld [vmem:[%s358_s11 + $0x8] sm:$0xff] }
  0xda   : > { %985 = vmatprep.subr.mxu1 %v604_v24 }
  0xdb   : > { %981 = vmatprep.mubr.msk.f32.mxu1 %vm497_vm1, %v484_v23  ;;  %989 = vmatpush1.msra.mxu1 %v603_v25 }
  0xdc   : > { %982 = vmatmul.mubr.msk.f32.gmra.mxu1 %vm497_vm1, %v485_v22  ;;  %986 = vmatprep.subr.mxu1 %v602_v26 }
  0xdd   : > { %990 = vmatpush1.msra.mxu1 %v601_v27  ;;  %713 = vmatprep.mubr.f32.mxu1 %v1033_v30  ;;  %v730_v27 = vld [vmem:[%s358_s11 + $0x10] sm:$0xff] }
  0xde   : > { %987 = vmatprep.subr.mxu1 %v600_v28 }
  0xdf   : > { %991 = vmatpush1.msra.mxu1 %v599_v29 }
 0x198   : > { %v980_v31 = vpop.f32.mrf.mxu1 }
 0x199   : > { %v582_v36 = vadd.f32 %v980_v31, %v934_v32 }
 0x19a   : > { %v576_v33 = vpop.f32.mrf.mxu1 }
 0x19b   : > { %v577_v34 = vadd.f32 %v934_v32, %v576_v33  ;;  %v596_v41 = vmax.f32 %v582_v36, 0.0 }
 0x19c   : > { %v983_v35 = vpop.f32.mrf.mxu1 }
 0x19d   : > { %v595_v37 = vmax.f32 %v577_v34, 0.0  ;;  %v592_v38 = vadd.f32 %v983_v35, %v934_v32 }
 0x19e   : > { %v586_v39 = vpop.f32.mrf.mxu1 }
 0x19f   : > { %v598_v40 = vmax.f32 %v592_v38, 0.0  ;;  %939 = vmatmul.mubr.msk.f32.vlgmr.msra.gmra.mxu0 %vm497_vm1, %v595_v37  ;;  %v587_v42 = vadd.f32 %v934_v32, %v586_v39 }
 0x1a0   : > { %701 = vmatprep.mubr.f32.mxu0 %v1033_v30 }
 0x1a1   : > { %942 = vmatmul.mubr.msk.f32.vlgmr.msra.gmra.mxu1 %vm497_vm1, %v598_v40  ;;  %v597_v43 = vmax.f32 %v587_v42, 0.0  ;;  %v757_v42 = vmul.f32 -0.5, %v728_v12 }
 0x1a3   : > { %940 = vmatmul.mubr.msk.f32.gmra.mxu0 %vm497_vm1, %v596_v41  ;;  %v761_v47 = vmul.f32 %v757_v42, %v728_v12 }
 0x1a4   : > { %707 = vmatprep.mubr.f32.mxu0 %v1033_v30 }
 0x1a7   : > { %941 = vmatmul.mubr.msk.f32.gmra.mxu0 %vm497_vm1, %v597_v43 }
 0x25f   : > { %v697_v49 = vpop.f32.mrf.mxu0 }
 0x260   : > { %v698_v13 = vadd.f32 %v697_v49, %v612_v10 }
 0x261   : > { %v699_v50 = vpop.f32.mrf.mxu0  ;;  %v715_v51 = vpop.f32.mrf.mxu1 }
 0x262   : > { %v700_v52 = vadd.f32 %v699_v50, %v616_v48  ;;  %v716_v18 = vadd.f32 %v715_v51, %v612_v10 }
 0x263   : > { %v703_v53 = vpop.f32.mrf.mxu0  ;;  %v717_v54 = vpop.f32.mrf.mxu1 }
 0x264   : > { %v720_v55 = vmax.f32 %v700_v52, -20.0  ;;  %v718_v56 = vadd.f32 %v717_v54, %v616_v48  ;;  %v704_v22 = vadd.f32 %v703_v53, %v612_v10  ;;  %v759_v52 = vmul.f32 -0.5, %v730_v27 }
 0x265   : > { %v705_v57 = vpop.f32.mrf.mxu0  ;;  %v760_v54 = vmul.f32 -0.5, %v731_v16 }
 0x266   : > { %v1154_v58 = vmin.f32 %v720_v55, 2.0  ;;  %v723_v59 = vmax.f32 %v718_v56, -20.0  ;;  %v706_v60 = vadd.f32 %v705_v57, %v616_v48 }
 0x267   : > { %v709_v61 = vpop.f32.mrf.mxu0 }
 0x268   : > { %v732_v62 = vmul.f32 1.442695, %v1154_v58  ;;  %v1157_v63 = vmin.f32 %v723_v59, 2.0  ;;  %v721_v0 = vmax.f32 %v706_v60, -20.0  ;;  %v710_v28 = vadd.f32 %v709_v61, %v612_v10 }
 0x269   : > { %v711_v1 = vpop.f32.mrf.mxu0  ;;  %v765_v50 = vsub.f32 %v761_v47, %v1154_v58  ;;  %v763_v59 = vmul.f32 %v759_v52, %v730_v27 }
 0x26a   : > { %1001 = vpow2.f32 %v732_v62  ;;  %v738_v2 = vmul.f32 1.442695, %v1157_v63  ;;  %v1160_v3 = vmin.f32 %v721_v0, 2.0  ;;  %v712_v4 = vadd.f32 %v711_v1, %v616_v48 }
 0x26b   : > { %v758_v48 = vmul.f32 -0.5, %v729_v21  ;;  %v943_v56 = vadd.f32 -0.9189385, %v765_v50  ;;  %v764_v62 = vmul.f32 %v760_v54, %v731_v16 }
 0x26c   : > { %1003 = vpow2.f32 %v738_v2  ;;  %v734_v5 = vmul.f32 1.442695, %v1160_v3  ;;  %v722_v6 = vmax.f32 %v712_v4, -20.0 }
 0x26d   : > { %v762_v51 = vmul.f32 %v758_v48, %v729_v21 }
 0x26e   : > { %1005 = vpow2.f32 %v734_v5  ;;  %v1163_v7 = vmin.f32 %v722_v6, 2.0  ;;  %v768_v6 = vsub.f32 %v764_v62, %v1157_v63 }
 0x26f   : > { %v766_v55 = vsub.f32 %v762_v51, %v1160_v3 }
 0x270   : > { %v736_v9 = vmul.f32 1.442695, %v1163_v7  ;;  %v767_v4 = vsub.f32 %v763_v59, %v1163_v7 }
 0x271   : > { %v944_v0 = vadd.f32 -0.9189385, %v766_v55 }
 0x272   : > { %1007 = vpow2.f32 %v736_v9  ;;  %v945_v9 = vadd.f32 -0.9189385, %v767_v4 }
 0x277   : > { %v1002_v11 = vpop.eup %1001 }
 0x278   : > { %v740_v14 = vmul.f32 %v1002_v11, %v728_v12  ;;  %v946_v12 = vadd.f32 -0.9189385, %v768_v6 }
 0x279   : > { %v1004_v15 = vpop.eup %1003 }
 0x27a   : > { %v744_v17 = vadd.f32 %v740_v14, %v698_v13  ;;  %v743_v19 = vmul.f32 %v1004_v15, %v731_v16 }
 0x27b   : > { %v1006_v20 = vpop.eup %1005 }
 0x27c   : > { %1009 = vtanh.f32 %v744_v17  ;;  %v747_v23 = vadd.f32 %v743_v19, %v716_v18  ;;  %v741_v24 = vmul.f32 %v1006_v20, %v729_v21 }
 0x27e   : > { %1011 = vtanh.f32 %v747_v23  ;;  %v745_v25 = vadd.f32 %v741_v24, %v704_v22 }
 0x27f   : > { %v1008_v26 = vpop.eup %1007 }
 0x280   : > { %1013 = vtanh.f32 %v745_v25  ;;  %v742_v29 = vmul.f32 %v1008_v26, %v730_v27 }
 0x282   : > { %v746_v30 = vadd.f32 %v742_v29, %v710_v28 }
 0x284   : > { %1015 = vtanh.f32 %v746_v30 }
 0x289   : > { %v1010_v31 = vpop.eup %1009 }
 0x28a   : > { %v773_v32 = vmul.f32 %v1010_v31, %v1010_v31  ;;  %753 = vst.msk [vmem:[%s364_s15] sm:$0xff] %vm752_vm2, %v1010_v31 }
 0x28b   : > { %v1012_v33 = vpop.eup %1011 }
 0x28c   : > { %v777_v34 = vsub.f32 1.0, %v773_v32  ;;  %v776_v35 = vmul.f32 %v1012_v33, %v1012_v33  ;;  %756 = vst.msk [vmem:[%s364_s15 + $0x18] sm:$0xff] %vm752_vm2, %v1012_v33 }
 0x28d   : > { %v1014_v36 = vpop.eup %1013 }
 0x28e   : > { %v781_v37 = vadd.f32 1e-07, %v777_v34  ;;  %754 = vst.msk [vmem:[%s364_s15 + $0x8] sm:$0xff] %vm752_vm2, %v1014_v36  ;;  %v774_v38 = vmul.f32 %v1014_v36, %v1014_v36  ;;  %v780_v39 = vsub.f32 1.0, %v776_v35 }
 0x290   : > { %1017 = vlog2.f32 %v781_v37  ;;  %v778_v40 = vsub.f32 1.0, %v774_v38  ;;  %v784_v45 = vadd.f32 1e-07, %v780_v39 }
 0x291   : > { %v1016_v41 = vpop.eup %1015 }
 0x292   : > { %v782_v43 = vadd.f32 1e-07, %v778_v40  ;;  %755 = vst.msk [vmem:[%s364_s15 + $0x10] sm:$0xff] %vm752_vm2, %v1016_v41  ;;  %v775_v44 = vmul.f32 %v1016_v41, %v1016_v41 }
 0x294   : > { %1019 = vlog2.f32 %v782_v43  ;;  %v779_v46 = vsub.f32 1.0, %v775_v44 }
 0x295   : > { %1021 = vlog2.f32 %v784_v45 }
 0x296   : > { %v783_v49 = vadd.f32 1e-07, %v779_v46 }
 0x298   : > { %1023 = vlog2.f32 %v783_v49 }
 0x29d   : > { %v1018_v53 = vpop.eup %1017 }
 0x29e   : > { %v786_v57 = vmul.f32 0.6931472, %v1018_v53 }
 0x2a0   : > { %v793_v60 = vsub.f32 %v943_v56, %v786_v57 }
 0x2a1   : > { %v1020_v61 = vpop.eup %1019 }
 0x2a2   : > { %v797_v1 = vsel %vm752_vm2, %v793_v60, 0.0  ;;  %v788_v2 = vmul.f32 0.6931472, %v1020_v61  ;;  %v1022_v58 = vpop.eup %1021 }
 0x2a3   : > { %798 = vadd.xlane.f32.xlu0 %v797_v1  ;;  %v792_v11 = vmul.f32 0.6931472, %v1022_v58 }
 0x2a4   : > { %v794_v5 = vsub.f32 %v944_v0, %v788_v2 }
 0x2a5   : > { %v1024_v8 = vpop.eup %1023  ;;  %v796_v15 = vsub.f32 %v946_v12, %v792_v11 }
 0x2a6   : > { %v800_v3 = vsel %vm752_vm2, %v794_v5, 0.0  ;;  %v790_v10 = vmul.f32 0.6931472, %v1024_v8 }
 0x2a7   : > { %801 = vadd.xlane.f32.xlu0 %v800_v3  ;;  %v806_v7 = vsel %vm752_vm2, %v796_v15, 0.0 }
 0x2a8   : > { %v795_v13 = vsub.f32 %v945_v9, %v790_v10 }
 0x2aa   : > { %v803_v14 = vsel %vm752_vm2, %v795_v13, 0.0 }
 0x2ab   : > { %804 = vadd.xlane.f32.xlu1 %v803_v14 }
 0x2af   : > { %807 = vadd.xlane.f32.xlu1 %v806_v7 }
 0x32c   : > { %v799_v63 = vpop.xlane.xlu0 %798 }
 0x32d   : > { %810 = vst.msk [vmem:[%s370_s18] sm:$0xff] %vm809_vm3, %v799_v63 }
 0x330   : > { %v802_v16 = vpop.xlane.xlu0 %801 }
 0x331   : > { %811 = vst.msk [vmem:[%s370_s18 + $0x8] sm:$0xff] %vm809_vm3, %v802_v16 }
 0x334   : > { %v805_v17 = vpop.xlane.xlu1 %804 }
 0x335   : > { %812 = vst.msk [vmem:[%s370_s18 + $0x10] sm:$0xff] %vm809_vm3, %v805_v17 }
 0x338   : > { %v808_v18 = vpop.xlane.xlu1 %807 }
 0x339   : > { %813 = vst.msk [vmem:[%s370_s18 + $0x18] sm:$0xff] %vm809_vm3, %v808_v18 }
 0x33a PF: > { %s20_s30 = sadd.s32 1, %s1031_s30  }
 0x33b   : > { %p17_p4 = scmp.ge.s32.totalorder %s20_s30, 4  }
 0x33d   :  { %19 = sbr.rel (!%p17_p4) target bundleno = 1 (0x1), region = 97 }

</bundles_post_ra>
